<compile_context>
chip_gen: v7x
topology: tpu7x:2x2x1
jax: 0.10.0
libtpu: 0.0.40
codegen_flags: <defaults>
</compile_context>

<pallas_src>
import math

import jax
import jax.numpy as jnp
from jax.experimental import pallas as pl
from jax.experimental.pallas import tpu as pltpu


# ----------------------------------------------------------------------------
# Linear kernel: o = x @ w_t + b, tiled over rows, bf16 MXU.
# ----------------------------------------------------------------------------
def _linear_kernel(x_ref, w_ref, b_ref, o_ref):
    o_ref[...] = (
        jnp.dot(
            x_ref[...].astype(jnp.bfloat16),
            w_ref[...],
            preferred_element_type=jnp.float32,
        )
        + b_ref[...]
    )


def linear_pallas(x2d, w_t, b2d, tile_m=512):
    M, K = x2d.shape
    N = w_t.shape[1]
    tm = min(tile_m, M)
    return pl.pallas_call(
        _linear_kernel,
        out_shape=jax.ShapeDtypeStruct((M, N), jnp.float32),
        grid=(pl.cdiv(M, tm),),
        in_specs=[
            pl.BlockSpec((tm, K), lambda i: (i, 0)),
            pl.BlockSpec((K, N), lambda i: (0, 0)),
            pl.BlockSpec((1, N), lambda i: (0, 0)),
        ],
        out_specs=pl.BlockSpec((tm, N), lambda i: (i, 0)),
        compiler_params=pltpu.CompilerParams(
            dimension_semantics=("parallel",),
            vmem_limit_bytes=64 * 1024 * 1024,
        ),
    )(x2d, w_t, b2d)


# ----------------------------------------------------------------------------
# One Mamba block, grid = (batch "parallel", L-chunk "arbitrary").
# SSM state and conv tail carried across chunks in VMEM scratch.
# ----------------------------------------------------------------------------
def _mamba_layer_kernel(
    x_ref, w_in_ref, cw_ref, cb_ref, w_xp_ref, w_dtp_ref, dtb_ref,
    a_ref, d_ref, w_out_ref,
    o_ref,
    dt_scr, dtu_scr, b_scr, c_scr, y_scr, st_scr, cc_scr,
):
    chunk_id = pl.program_id(1)

    @pl.when(chunk_id == 0)
    def _():
        st_scr[...] = jnp.zeros_like(st_scr)     # fresh SSM state per sequence
        cc_scr[...] = jnp.zeros_like(cc_scr)     # causal conv left-pad = zeros

    x = x_ref[0]                                  # (CHUNK, d_model) f32
    CHUNK = x.shape[0]
    d_state, d_inner = a_ref.shape
    DA_BLK = math.gcd(CHUNK, 8)                   # unrolled scan block
    n_blk = CHUNK // DA_BLK

    # ---- packed in_proj (bf16 MXU), split into x / z halves ----------------
    xz = jnp.dot(
        x.astype(jnp.bfloat16), w_in_ref[...], preferred_element_type=jnp.float32
    )                                             # (CHUNK, 2*d_inner) f32
    xa = xz[:, :d_inner]
    z = xz[:, d_inner:]

    # ---- causal depthwise conv1d (d_conv == 2), carry last row across chunks
    # prev[l] = xa[l-1]; row 0 comes from the previous chunk's tail (cc_scr).
    row = jax.lax.broadcasted_iota(jnp.int32, (CHUNK, 1), 0)
    prev = pltpu.roll(xa, shift=1, axis=0)        # XLU rotate (jnp.roll semantics)
    prev = jnp.where(row >= 1, prev, cc_scr[...])
    xc = cb_ref[...] + cw_ref[1:2, :] * xa + cw_ref[0:1, :] * prev
    cc_scr[...] = xa[CHUNK - 1:CHUNK, :]          # tail for the next chunk
    u = xc * jax.nn.sigmoid(xc)                   # SiLU, (CHUNK, d_inner) f32

    # ---- packed x_proj: [B | C | dt_low], then small low-rank dt_proj ------
    ub = u.astype(jnp.bfloat16)
    xdbc = jnp.dot(ub, w_xp_ref[...], preferred_element_type=jnp.float32)
    b_scr[...] = xdbc[:, :d_state]
    c_scr[...] = xdbc[:, d_state:2 * d_state]
    dt_low = xdbc[:, 2 * d_state:]                # (CHUNK, dt_rank)
    dt = jax.nn.softplus(
        jnp.dot(
            dt_low.astype(jnp.bfloat16), w_dtp_ref[...],
            preferred_element_type=jnp.float32,
        )
        + dtb_ref[...]
    )                                             # (CHUNK, d_inner) f32
    dt_scr[...] = dt
    dtu_scr[...] = dt * u

    # ---- selective scan: blocks of DA_BLK steps, statically unrolled -------
    a_t = a_ref[...]                              # (d_state, d_inner) = -exp(A_log).T

    def block_body(blk, carry):
        base = pl.multiple_of(blk * DA_BLK, DA_BLK)
        dt_blk = dt_scr[pl.ds(base, DA_BLK), :]   # (DA_BLK, d_inner)
        dtu_blk = dtu_scr[pl.ds(base, DA_BLK), :]
        c_blk = c_scr[pl.ds(base, DA_BLK), :]     # (DA_BLK, d_state)
        bT_blk = jnp.transpose(b_scr[pl.ds(base, DA_BLK), :])  # (d_state, DA_BLK)
        st = st_scr[...]                          # state stays in vregs in-block
        ys = []
        for j in range(DA_BLK):                   # static unroll
            # exp has no loop-carried dependence -> EUP runs ahead of recurrence
            dA_j = jnp.exp(a_t * dt_blk[j:j + 1, :])          # (d_state, d_inner)
            st = dA_j * st + bT_blk[:, j:j + 1] * dtu_blk[j:j + 1, :]
            ys.append(
                jnp.dot(c_blk[j:j + 1, :], st, preferred_element_type=jnp.float32)
            )                                                  # (1, d_inner)
        st_scr[...] = st                          # one writeback per block
        y_scr[pl.ds(base, DA_BLK), :] = jnp.concatenate(ys, axis=0)
        return carry

    jax.lax.fori_loop(0, n_blk, block_body, 0)

    # ---- skip term, gating, out_proj ---------------------------------------
    y = y_scr[...] + u * d_ref[...]
    y = y * (z * jax.nn.sigmoid(z))
    o_ref[0] = jnp.dot(
        y.astype(jnp.bfloat16), w_out_ref[...], preferred_element_type=jnp.float32
    )


def mamba_layer_pallas(x, lp, seq_chunk=256):
    B, L, d_model = x.shape
    d_state, d_inner = lp["A_t"].shape
    assert lp["conv_w"].shape[0] == 2, "kernel specialized for d_conv=2 (reference model)"

    # Pick an L-chunk: largest multiple of 8 <= seq_chunk dividing L, else full L.
    chunk = L
    if L % 8 == 0:
        c = min(seq_chunk, L)
        c -= c % 8
        while c >= 8 and L % c:
            c -= 8
        if c >= 8:
            chunk = c
    n_chunks = L // chunk

    weights = [
        lp["w_in"], lp["conv_w"], lp["conv_b"], lp["w_xp"], lp["w_dtp"],
        lp["dt_b"], lp["A_t"], lp["D"], lp["w_out"],
    ]

    def const_spec(a):
        return pl.BlockSpec(a.shape, lambda b, c, _n=a.ndim: (0,) * _n)

    in_specs = [pl.BlockSpec((1, chunk, d_model), lambda b, c: (b, c, 0))] + [
        const_spec(w) for w in weights
    ]

    return pl.pallas_call(
        _mamba_layer_kernel,
        out_shape=jax.ShapeDtypeStruct((B, L, d_model), jnp.float32),
        grid=(B, n_chunks),
        in_specs=in_specs,
        out_specs=pl.BlockSpec((1, chunk, d_model), lambda b, c: (b, c, 0)),
        scratch_shapes=[
            pltpu.VMEM((chunk, d_inner), jnp.float32),     # dt
            pltpu.VMEM((chunk, d_inner), jnp.float32),     # dt * u
            pltpu.VMEM((chunk, d_state), jnp.float32),     # B rows
            pltpu.VMEM((chunk, d_state), jnp.float32),     # C rows
            pltpu.VMEM((chunk, d_inner), jnp.float32),     # y rows
            pltpu.VMEM((d_state, d_inner), jnp.float32),   # running SSM state
            pltpu.VMEM((1, d_inner), jnp.float32),         # conv carry (prev tail)
        ],
        compiler_params=pltpu.CompilerParams(
            dimension_semantics=("parallel", "arbitrary"),
            vmem_limit_bytes=64 * 1024 * 1024,
        ),
    )(x, *weights)


# ----------------------------------------------------------------------------
# Parameter init: synthetic PyTorch-shaped params, converted ONCE to the
# kernel-ready layout (transposed, packed, bf16 matmul weights, A = -exp(A_log)).
# ----------------------------------------------------------------------------
def init_params(key, input_size, hidden_size, num_layers, num_classes,
                d_state=64, d_conv=2, expand=2):
    d_model = hidden_size
    d_inner = expand * d_model
    dt_rank = math.ceil(d_model / 16)

    def dense(k, shape, scale=0.02):
        return scale * jax.random.normal(k, shape, jnp.float32)

    keys = jax.random.split(key, 2 + num_layers)
    ke = jax.random.split(keys[0], 2)
    kf = jax.random.split(keys[1], 2)
    params = {
        "expander": {
            "w_t": dense(ke[0], (hidden_size, input_size)).T.astype(jnp.bfloat16),
            "b": dense(ke[1], (hidden_size,)).reshape(1, -1),
        },
        "fc": {
            "w_t": dense(kf[0], (num_classes, hidden_size)).T.astype(jnp.bfloat16),
            "b": dense(kf[1], (num_classes,)).reshape(1, -1),
        },
        "layers": [],
        "dims": dict(d_model=d_model, d_inner=d_inner, d_state=d_state,
                     d_conv=d_conv, dt_rank=dt_rank),
    }

    for li in range(num_layers):
        ks = jax.random.split(keys[2 + li], 7)
        # PyTorch-shaped parameters (as mamba_ssm.Mamba would hold them).
        in_proj_w = dense(ks[0], (2 * d_inner, d_model))
        conv_w = dense(ks[1], (d_inner, 1, d_conv))
        conv_b = dense(ks[2], (d_inner,))
        x_proj_w = dense(ks[3], (dt_rank + 2 * d_state, d_inner))
        dt_proj_w = dense(ks[4], (d_inner, dt_rank))
        dt_proj_b = dense(ks[5], (d_inner,)) + 0.1
        A_log = jnp.log(jnp.tile(
            jnp.arange(1, d_state + 1, dtype=jnp.float32)[None, :], (d_inner, 1)))
        D = jnp.ones((d_inner,), jnp.float32)
        out_proj_w = dense(ks[6], (d_model, d_inner))

        # Kernel-ready layout (done once, not per forward call).
        w_x = in_proj_w[:d_inner].T                          # (d_model, d_inner)
        w_z = in_proj_w[d_inner:].T                          # (d_model, d_inner)
        w_dt_low = x_proj_w[:dt_rank].T                      # (d_inner, dt_rank)
        w_B = x_proj_w[dt_rank: dt_rank + d_state].T         # (d_inner, d_state)
        w_C = x_proj_w[dt_rank + d_state:].T                 # (d_inner, d_state)
        params["layers"].append({
            "w_in": jnp.concatenate([w_x, w_z], axis=1).astype(jnp.bfloat16),
            "conv_w": conv_w[:, 0, :].T,                     # (d_conv, d_inner) f32
            "conv_b": conv_b.reshape(1, -1),                 # (1, d_inner) f32
            # packed x_proj output order: [B | C | dt_low]
            "w_xp": jnp.concatenate([w_B, w_C, w_dt_low], axis=1).astype(jnp.bfloat16),
            "w_dtp": dt_proj_w.T.astype(jnp.bfloat16),       # (dt_rank, d_inner)
            "dt_b": dt_proj_b.reshape(1, -1),                # (1, d_inner) f32
            "A_t": -jnp.exp(A_log).T,                        # (d_state, d_inner) f32
            "D": D.reshape(1, -1),                           # (1, d_inner) f32
            "w_out": out_proj_w.T.astype(jnp.bfloat16),      # (d_inner, d_model)
        })
    return params


def mamba_model_forward(x, params, seq_chunk=256):
    B, L, input_size = x.shape
    d_model = params["dims"]["d_model"]
    h = linear_pallas(
        x.reshape(B * L, input_size),
        params["expander"]["w_t"],
        params["expander"]["b"],
    ).reshape(B, L, d_model)
    for lp in params["layers"]:
        h = mamba_layer_pallas(h, lp, seq_chunk=seq_chunk)
    out = linear_pallas(h[:, -1, :], params["fc"]["w_t"], params["fc"]["b"])
    return out
    # TODO(synk): sample_action (host-side epsilon-greedy) is Python control
    # flow on the host, not a kernel; only forward() is implemented here.


if __name__ == "__main__":
    key = jax.random.PRNGKey(0)
    B, L = 2, 16
    input_size, hidden_size, num_layers, num_classes = 16, 32, 2, 3

    kx, kp = jax.random.split(key)
    x = jax.random.normal(kx, (B, L, input_size), jnp.float32)
    params = init_params(kp, input_size, hidden_size, num_layers, num_classes)

    # seq_chunk=8 exercises the cross-chunk state / conv-tail carry (2 chunks).
    out = mamba_model_forward(x, params, seq_chunk=8)
    out = jax.block_until_ready(out)
    assert out.shape == (B, num_classes)
    print("KERNEL_OK")
</pallas_src>

<mosaic_0001>
module attributes {stable_mosaic.version = 11 : i64} {
  func.func @_linear_kernel(%arg0: i32, %arg1: memref<32x16xf32, #tpu.memory_space<vmem>>, %arg2: memref<16x32xbf16, #tpu.memory_space<vmem>>, %arg3: memref<1x32xf32, #tpu.memory_space<vmem>>, %arg4: memref<32x32xf32, #tpu.memory_space<vmem>>) attributes {dimension_semantics = [#tpu.dimension_semantics<parallel>], iteration_bounds = array<i64: 1>, scalar_prefetch = 0 : i64, scratch_operands = 0 : i64, tpu.core_type = #tpu.core_type<tc>, window_params = [{transform_indices = @transform_0, window_bounds = array<i64: 32, 16>}, {pipeline_mode = #tpu.pipeline_mode<synchronous>, transform_indices = @transform_1, window_bounds = array<i64: 16, 32>}, {pipeline_mode = #tpu.pipeline_mode<synchronous>, transform_indices = @transform_2, window_bounds = array<i64: 1, 32>}, {transform_indices = @transform_3, window_bounds = array<i64: 32, 32>}]} {
    %c0 = arith.constant 0 : index
    %c0_0 = arith.constant 0 : index
    %0 = vector.load %arg1[%c0, %c0_0] : memref<32x16xf32, #tpu.memory_space<vmem>>, vector<32x16xf32>
    %1 = arith.truncf %0 : vector<32x16xf32> to vector<32x16xbf16>
    %c0_1 = arith.constant 0 : index
    %c0_2 = arith.constant 0 : index
    %2 = vector.load %arg2[%c0_1, %c0_2] : memref<16x32xbf16, #tpu.memory_space<vmem>>, vector<16x32xbf16>
    %cst = arith.constant dense<0.000000e+00> : vector<32x32xf32>
    %3 = tpu.matmul %1, %2, %cst {dimension_numbers = #tpu.dot_dimension_numbers<[1], [0], [0], [1], [0, 0, 1, 1], [], []>} : vector<32x16xbf16>, vector<16x32xbf16>, vector<32x32xf32> -> vector<32x32xf32>
    %c0_3 = arith.constant 0 : index
    %c0_4 = arith.constant 0 : index
    %4 = vector.load %arg3[%c0_3, %c0_4] : memref<1x32xf32, #tpu.memory_space<vmem>>, vector<1x32xf32>
    %5 = vector.broadcast %4 : vector<1x32xf32> to vector<32x32xf32>
    %6 = arith.addf %3, %5 : vector<32x32xf32>
    %c0_5 = arith.constant 0 : index
    %c0_6 = arith.constant 0 : index
    %7 = vector.load %arg4[%c0_5, %c0_6] : memref<32x32xf32, #tpu.memory_space<vmem>>, vector<32x32xf32>
    tpu.vector_store %arg4[%c0_5, %c0_6], %6 {strides = array<i32>} : memref<32x32xf32, #tpu.memory_space<vmem>>, vector<32x32xf32>,
    return
  }
  func.func @transform_0(%arg0: i32) -> (i32, i32) {
    %c0_i32 = arith.constant 0 : i32
    %c0_i32_0 = arith.constant 0 : i32
    return %arg0, %c0_i32 : i32, i32
  }
  func.func @transform_1(%arg0: i32) -> (i32, i32) {
    %c0_i32 = arith.constant 0 : i32
    %c0_i32_0 = arith.constant 0 : i32
    %c0_i32_1 = arith.constant 0 : i32
    return %c0_i32, %c0_i32_0 : i32, i32
  }
  func.func @transform_2(%arg0: i32) -> (i32, i32) {
    %c0_i32 = arith.constant 0 : i32
    %c0_i32_0 = arith.constant 0 : i32
    %c0_i32_1 = arith.constant 0 : i32
    return %c0_i32, %c0_i32_0 : i32, i32
  }
  func.func @transform_3(%arg0: i32) -> (i32, i32) {
    %c0_i32 = arith.constant 0 : i32
    %c0_i32_0 = arith.constant 0 : i32
    return %arg0, %c0_i32 : i32, i32
  }
}

</mosaic_0001>

<bundles_post_ra>
// kernel: tpu_custom_call.1
= control target key start
LH: loop header
LB: loop body
LE: loop exit
PB: predicated region body
PF: predicated region fallthrough
CT: control target
= control target key end

     0   :  { %8 = vsyncpa [#allocation3], 0  ;;  %s353_s0 = inlined_call_operand.hbm [shape: f32[32,16], index: 0, kind: input, shape index: {}]   ;;  %s354_s1 = inlined_call_operand.hbm [shape: bf16[16,32], index: 1, kind: input, shape index: {}]   ;;  %s355_s2 = inlined_call_operand.hbm [shape: f32[1,32], index: 2, kind: input, shape index: {}]   ;;  %s356_s3 = inlined_call_operand.hbm [shape: f32[32,32], index: 3, kind: output, shape index: {}]  }
   0x1   :  { %9 = vsyncpa [#allocation6], 0 }
   0x2   :  { %10 = vsyncpa [#allocation4], 0  ;;  %s271_s12 = smov [#allocation5]   ;;  %s177_s16 = scalar_lea.hbm %s354_s1, 128 }
   0x3   :  { %s28_s13 = sshll.u32 %s271_s12, 4  ;;  %p178_p0 = scmp.ne.s32.totalorder %s354_s1, %s177_s16  ;;  %s29_s13 = int_to_ptr.vmem [resolvable:$true] %s28_s13 }
   0x4   :  { %p181_p1 = scmp.lt.u32.totalorder %s177_s16, %s354_s1 }
   0x6   :  { %p183_p2 = pnand %p181_p1, %p178_p0 }
   0x8   :  { %186 = shalt.err (!%p183_p2)
}
   0x9   :  { %s187_s21 = scalar_lea.vmem %s29_s13, 128  ;;  %p192_p4 = scmp.lt.s32.totalorder %s29_s13, %s29_s13 }
   0xa   :  { %p188_p3 = scmp.ne.s32.totalorder %s29_s13, %s187_s21  ;;  %p193_p5 = scmp.lt.s32.totalorder %s187_s21, %s187_s21 }
   0xc   :  { %p194_p6 = por %p193_p5, %p192_p4 }
   0xe   :  { %p195_p7 = pnand %p194_p6, %p188_p3 }
  0x10   :  { %198 = shalt.err (!%p195_p7)
}
  0x11   :  { %s272_s22 = smov 64   ;;  %s273_s23 = smov 4  }
  0x12   :  { %34 = dma.hbm_to_vmem [thread:$0]  %s354_s1, 128, %s29_s13, [#allocation6], %s272_s22, %s272_s22, %s273_s23  }
  0x13   :  { %s274_s26 = smov [#allocation2]   ;;  %s199_s30 = scalar_lea.hbm %s353_s0, 512 }
  0x14   :  { %s16_s27 = sshll.u32 %s274_s26, 4  ;;  %p200_p8 = scmp.ne.s32.totalorder %s353_s0, %s199_s30  ;;  %s17_s27 = int_to_ptr.vmem [resolvable:$true] %s16_s27 }
  0x15   :  { %p203_p9 = scmp.lt.u32.totalorder %s199_s30, %s353_s0 }
  0x17   :  { %p205_p10 = pnand %p203_p9, %p200_p8 }
  0x19   :  { %208 = shalt.err (!%p205_p10)
}
  0x1a   :  { %s209_s8 = scalar_lea.vmem %s17_s27, 512  ;;  %p214_p12 = scmp.lt.s32.totalorder %s17_s27, %s17_s27 }
  0x1b   :  { %p210_p11 = scmp.ne.s32.totalorder %s17_s27, %s209_s8  ;;  %p215_p13 = scmp.lt.s32.totalorder %s209_s8, %s209_s8 }
  0x1d   :  { %p216_p0 = por %p215_p13, %p214_p12 }
  0x1f   :  { %p217_p1 = pnand %p216_p0, %p210_p11 }
  0x21   :  { %220 = shalt.err (!%p217_p1)
}
  0x22   :  { %s275_s1 = smov 128   ;;  %s276_s9 = smov 8  }
  0x23   :  { %22 = dma.hbm_to_vmem [thread:$0]  %s353_s0, 512, %s17_s27, [#allocation3], %s275_s1, %s275_s1, %s276_s9  }
  0x24   :  { %s277_s12 = smov [#allocation7]   ;;  %s221_s16 = scalar_lea.hbm %s355_s2, 16 }
  0x25   :  { %s41_s13 = sshll.u32 %s277_s12, 4  ;;  %p222_p2 = scmp.ne.s32.totalorder %s355_s2, %s221_s16  ;;  %s42_s13 = int_to_ptr.vmem [resolvable:$true] %s41_s13 }
  0x26   :  { %p225_p3 = scmp.lt.u32.totalorder %s221_s16, %s355_s2 }
  0x28   :  { %p227_p4 = pnand %p225_p3, %p222_p2 }
  0x2a   :  { %230 = shalt.err (!%p227_p4)
}
  0x2b   :  { %s231_s21 = scalar_lea.vmem %s42_s13, 16  ;;  %s235_s0 = scalar_lea.vmem %s42_s13, 32 }
  0x2c   :  { %p232_p5 = scmp.ne.s32.totalorder %s42_s13, %s231_s21  ;;  %p236_p6 = scmp.lt.s32.totalorder %s42_s13, %s42_s13 }
  0x2d   :  { %p237_p7 = scmp.lt.s32.totalorder %s235_s0, %s231_s21 }
  0x2f   :  { %p238_p8 = por %p237_p7, %p236_p6 }
  0x31   :  { %p239_p9 = pnand %p238_p8, %p232_p5 }
  0x33   :  { %242 = shalt.err (!%p239_p9)
}
  0x34   :  { %44 = dma.hbm_to_vmem [thread:$0]  %s355_s2, 16, %s42_s13, [#allocation6]  }
  0x35   :  { %265 = dma.done.wait [#allocation3], 512  }
  0x36   :  { %266 = vsyncadd [#allocation3], 4294966784 }
  0x37   :  { %267 = dma.done.wait [#allocation6], 144  }
  0x38   :  { %268 = vsyncadd [#allocation6], 4294967152  ;;  %v176_v0 = vld [vmem:[#allocation5] sm:$0xff]   ;;  %v56_v2 = vld [vmem:[#allocation2 + $0x8] sm:$0xff]  ;;  %vm76_vm0 = vcmask 130048   ;;  %vm132_vm1 = vcmask 261120  }
  0x39   :  { %v55_v1 = vld [vmem:[#allocation2] sm:$0xff]  ;;  %v57_v3 = vld [vmem:[#allocation2 + $0x10] sm:$0xff]  ;;  %162 = vmatprep.subr.bf16.mxu0 %v176_v0  ;;  %v58_v5 = vld [vmem:[#allocation2 + $0x18] sm:$0xff]  ;;  %s278_s2 = smov [#allocation8]  }
  0x3a   :  { %v59_v4 = vpack.c.bf16 %v56_v2, %v55_v1  ;;  %163 = vmatpush3.bf16.msra.mxu0 %v176_v0  ;;  %v60_v6 = vpack.c.bf16 %v58_v5, %v57_v3  ;;  %v155_v7 = vld [vmem:[#allocation7] ss:$0 sm:$0xff]  ;;  %s142_s24 = sshll.u32 %s278_s2, 4  ;;  %s143_s24 = int_to_ptr.vmem [resolvable:$true] %s142_s24 }
  0x3b   :  { %s243_s25 = scalar_lea.vmem %s143_s24, 512  ;;  %p248_p11 = scmp.lt.s32.totalorder %s143_s24, %s143_s24 }
  0x3c   :  { %164 = vmatprep.mubr.msk.bf16.mxu0 %vm76_vm0, %v59_v4  ;;  %p244_p10 = scmp.ne.s32.totalorder %s143_s24, %s243_s25  ;;  %p249_p12 = scmp.lt.s32.totalorder %s243_s25, %s243_s25 }
  0x3d   :  { %165 = vmatmul.mubr.msk.bf16.vlgmr.msra.gmra.mrb[0].mxu0 %vm76_vm0, %v60_v6 }
  0x3e   :  { %p250_p13 = por %p249_p12, %p248_p11 }
  0x40   :  { %p251_p0 = pnand %p250_p13, %p244_p10 }
 0x110   :  { %v166_v8 = vpop.f32.mrb[0].mxu0 }
 0x111   :  { %v126_v9 = vadd.f32 %v166_v8, %v155_v7  ;;  %v117_v10 = vpop.f32.mrb[1].mxu0 }
 0x112   :  { %v118_v11 = vadd.f32 %v155_v7, %v117_v10  ;;  %v167_v12 = vpop.f32.mrb[2].mxu0 }
 0x113   :  { %135 = vst.msk [vmem:[#allocation8 + $0x10] sm:$0xff] %vm132_vm1, %v126_v9  ;;  %v129_v13 = vadd.f32 %v167_v12, %v155_v7  ;;  %v120_v14 = vpop.f32.mrb[3].mxu0 }
 0x114   :  { %133 = vst.msk [vmem:[#allocation8] sm:$0xff] %vm132_vm1, %v118_v11  ;;  %v121_v15 = vadd.f32 %v155_v7, %v120_v14 }
 0x115   :  { %136 = vst.msk [vmem:[#allocation8 + $0x18] sm:$0xff] %vm132_vm1, %v129_v13 }
 0x116   :  { %134 = vst.msk [vmem:[#allocation8 + $0x8] sm:$0xff] %vm132_vm1, %v121_v15 }
 0x117   :  { %254 = shalt.err (!%p251_p0)
}
 0x118   :  { %s255_s28 = scalar_lea.hbm %s356_s3, 512 }
 0x119   :  { %p256_p1 = scmp.ne.s32.totalorder %s356_s3, %s255_s28  ;;  %p259_p2 = scmp.lt.u32.totalorder %s255_s28, %s356_s3 }
 0x11b   :  { %p261_p3 = pnand %p259_p2, %p256_p1 }
 0x11d   :  { %264 = shalt.err (!%p261_p3)
}
 0x11e   :  { %148 = dma.vmem_to_hbm [thread:$0]  %s143_s24, 512, %s356_s3, [#allocation4], %s275_s1, %s275_s1, %s276_s9  }
 0x11f   :  { %269 = dma.done.wait [#allocation4], 512  }
 0x120   :  { %270 = vsyncadd [#allocation4], 4294966784 }
 0x121   :  { %152 = vsyncpa [#allocation3], 1 }
 0x122   :  { %153 = vsyncpa [#allocation6], 1 }
 0x123   :  { %154 = vsyncpa [#allocation4], 1 }

</bundles_post_ra>
